<compile_context>
chip_gen: v6e
topology: v6e:2x2x1
jax: 0.10.0
libtpu: 0.0.40
codegen_flags: <defaults>
</compile_context>

<pallas_src>
import jax
import jax.numpy as jnp
from jax.experimental import pallas as pl
from jax.experimental.pallas import tpu as pltpu

_LANE = 128
_PALLAS_MIN_BYTES = 256 * 1024     # below this, plain XLA wins
_MIN_BLOCK_BYTES = 512 * 1024      # combined (in+out) lower bound per block
_MIN_GRID_STEPS = 8                # enough steps to pipeline + shard 2 TCs


def _min_sublanes(dtype):
    # Minimum sublane tiling per dtype width: f32 -> 8, bf16 -> 16, int8/fp8 -> 32.
    itemsize = jnp.dtype(dtype).itemsize
    return {4: 8, 2: 16, 1: 32}.get(itemsize, 8)


def _pick_lane_width(n):
    # Widest lane-dense last dim (multiple of 128) that divides n exactly.
    for w in (4096, 2048, 1024, 512, 256, 128):
        if n % w == 0:
            return w
    return None


def _hw_params():
    """(target combined block bytes, vmem_limit_bytes), generation-aware."""
    gen = None
    try:
        kind = jax.devices()[0].device_kind.lower()
        if "v7" in kind:
            gen = 7
        elif "v6" in kind:
            gen = 6
        elif "v5" in kind:
            gen = 5
    except Exception:
        pass
    if gen == 7:
        # 64 MiB VMEM/TC: 16 MiB combined blocks -> 32 MiB double-buffered.
        return 16 * 1024 * 1024, 40 * 1024 * 1024
    if gen == 6:
        # 128 MiB VMEM: plenty of headroom for 16 MiB combined blocks.
        return 16 * 1024 * 1024, 48 * 1024 * 1024
    # v5e / unknown: conservative (8 MiB blocks already ~10 us of DMA).
    return 8 * 1024 * 1024, 32 * 1024 * 1024


def _choose_block_rows(rows, sub, bytes_per_row, target_block_bytes):
    total = rows * bytes_per_row
    # Tiny slab: one block equal to the full array (no divisibility constraint).
    if rows <= sub or total <= 2 * _MIN_BLOCK_BYTES:
        return rows
    rows_floor = (rows // sub) * sub
    # Upper bound from the per-block VMEM budget.
    by_bytes = max(sub, (target_block_bytes // bytes_per_row) // sub * sub)
    # Upper bound from the minimum number of grid steps (pipelining / megacore).
    by_steps = max(sub, (pl.cdiv(rows, _MIN_GRID_STEPS) + sub - 1) // sub * sub)
    block_rows = max(sub, min(by_bytes, by_steps, rows_floor))
    # Lower bound: don't over-split into sub-512 KiB blocks.
    min_rows = (pl.cdiv(_MIN_BLOCK_BYTES, bytes_per_row) + sub - 1) // sub * sub
    block_rows = max(block_rows, min(min_rows, rows_floor))
    # Prefer a block_rows that divides rows evenly: keeps every store unmasked
    # and every DMA full-length instead of a short masked tail block.
    for cand in range(block_rows, max(sub, block_rows // 2) - 1, -sub):
        if rows % cand == 0:
            return cand
    return block_rows


def _scale_kernel(scale_ref, x_ref, o_ref):
    s = scale_ref[0]  # one SMEM sld per grid step: invisible for an HBM-bound op
    o_ref[...] = (x_ref[...].astype(jnp.float32) * s).astype(o_ref.dtype)


def _scale_slab(x2d, scale_arr, out_dtype):
    """y = scale * x for a 2D lane-dense slab (rows, width), width % 128 == 0."""
    rows, width = x2d.shape
    in_dt = x2d.dtype
    sub = max(_min_sublanes(in_dt), _min_sublanes(out_dtype))
    bytes_per_row = width * (jnp.dtype(in_dt).itemsize + jnp.dtype(out_dtype).itemsize)

    target_block_bytes, vmem_limit_bytes = _hw_params()
    block_rows = _choose_block_rows(rows, sub, bytes_per_row, target_block_bytes)
    grid = (pl.cdiv(rows, block_rows),)

    return pl.pallas_call(
        _scale_kernel,
        out_shape=jax.ShapeDtypeStruct((rows, width), out_dtype),
        grid=grid,
        in_specs=[
            pl.BlockSpec(memory_space=pltpu.MemorySpace.SMEM),  # scale scalar
            pl.BlockSpec((block_rows, width), lambda i: (i, 0)),
        ],
        out_specs=pl.BlockSpec((block_rows, width), lambda i: (i, 0)),
        compiler_params=pltpu.CompilerParams(
            dimension_semantics=("parallel",),  # shards the grid over v7x's 2 TCs
            vmem_limit_bytes=vmem_limit_bytes,
        ),
    )(scale_arr, x2d)


def multiply_activation(x, scale=1.0, *, force_pallas: bool = False):
    """Elementwise y = scale * x (MultiplyActivation.forward) via Pallas on TPU."""
    x = jnp.asarray(x)
    out_dtype = jnp.result_type(x, scale)
    orig_shape = x.shape
    n = x.size
    if n == 0:
        return jnp.zeros(orig_shape, out_dtype)

    in_bytes = n * jnp.dtype(x.dtype).itemsize
    if not force_pallas and in_bytes < _PALLAS_MIN_BYTES:
        # Tiny input: kernel launch overhead dwarfs the work; let XLA fuse it.
        return (x * scale).astype(out_dtype)

    scale_arr = jnp.asarray(scale, dtype=jnp.float32).reshape((1,))
    x_flat = x.reshape(-1)

    width = _pick_lane_width(n)
    if width is not None:
        rows = n // width
        y_flat = _scale_slab(x_flat.reshape(rows, width), scale_arr, out_dtype).reshape(-1)
    else:
        # Ragged: kernel on the aligned prefix, plain XLA on the short tail.
        sub = max(_min_sublanes(x.dtype), _min_sublanes(out_dtype))
        align = sub * _LANE
        n_main = (n // align) * align
        if n_main == 0:
            return (x * scale).astype(out_dtype)
        w_main = _pick_lane_width(n_main)
        head = _scale_slab(
            x_flat[:n_main].reshape(n_main // w_main, w_main), scale_arr, out_dtype
        ).reshape(-1)
        tail = (x_flat[n_main:] * scale).astype(out_dtype)
        y_flat = jnp.concatenate([head, tail])

    return y_flat.reshape(orig_shape)


if __name__ == "__main__":
    key = jax.random.PRNGKey(0)
    # NCHW activation, small shapes: batch=2, channels=4, spatial=16x16
    x = jax.random.normal(key, (2, 4, 16, 16), dtype=jnp.float32)
    scale = 2.5

    # Default API path (tiny input -> XLA fast path).
    y = jax.block_until_ready(multiply_activation(x, scale=scale))
    # Also exercise the Pallas kernel itself on the same input.
    y_kernel = jax.block_until_ready(multiply_activation(x, scale=scale, force_pallas=True))

    y_ref = scale * x
    assert y.shape == x.shape and y.dtype == y_ref.dtype
    assert y_kernel.shape == x.shape and y_kernel.dtype == y_ref.dtype
    assert jnp.allclose(y, y_ref, rtol=1e-6, atol=1e-6)
    assert jnp.allclose(y_kernel, y_ref, rtol=1e-6, atol=1e-6)

    print("KERNEL_OK")
</pallas_src>

<mosaic_0001>
module attributes {stable_mosaic.version = 11 : i64} {
  func.func @_scale_kernel(%arg0: i32, %arg1: memref<1xf32, #tpu.memory_space<smem>>, %arg2: memref<1x2048xf32, #tpu.memory_space<vmem>>, %arg3: memref<1x2048xf32, #tpu.memory_space<vmem>>) attributes {dimension_semantics = [#tpu.dimension_semantics<parallel>], iteration_bounds = array<i64: 1>, scalar_prefetch = 0 : i64, scratch_operands = 0 : i64, tpu.core_type = #tpu.core_type<tc>, window_params = [{transform_indices = @transform_0, window_bounds = array<i64: 1>}, {transform_indices = @transform_1, window_bounds = array<i64: 1, 2048>}, {transform_indices = @transform_2, window_bounds = array<i64: 1, 2048>}]} {
    %c0 = arith.constant 0 : index
    %0 = memref.load %arg1[%c0] : memref<1xf32, #tpu.memory_space<smem>>
    %c0_0 = arith.constant 0 : index
    %c0_1 = arith.constant 0 : index
    %1 = vector.load %arg2[%c0_0, %c0_1] : memref<1x2048xf32, #tpu.memory_space<vmem>>, vector<1x2048xf32>
    %2 = vector.broadcast %0 : f32 to vector<1x2048xf32>
    %3 = arith.mulf %1, %2 : vector<1x2048xf32>
    %c0_2 = arith.constant 0 : index
    %c0_3 = arith.constant 0 : index
    %4 = vector.load %arg3[%c0_2, %c0_3] : memref<1x2048xf32, #tpu.memory_space<vmem>>, vector<1x2048xf32>
    tpu.vector_store %arg3[%c0_2, %c0_3], %3 {strides = array<i32>} : memref<1x2048xf32, #tpu.memory_space<vmem>>, vector<1x2048xf32>,
    return
  }
  func.func @transform_0(%arg0: i32) -> i32 {
    %c0_i32 = arith.constant 0 : i32
    %c0_i32_0 = arith.constant 0 : i32
    return %c0_i32 : i32
  }
  func.func @transform_1(%arg0: i32) -> (i32, i32) {
    %c0_i32 = arith.constant 0 : i32
    %c0_i32_0 = arith.constant 0 : i32
    return %arg0, %c0_i32 : i32, i32
  }
  func.func @transform_2(%arg0: i32) -> (i32, i32) {
    %c0_i32 = arith.constant 0 : i32
    %c0_i32_0 = arith.constant 0 : i32
    return %arg0, %c0_i32 : i32, i32
  }
}

</mosaic_0001>

<bundles_post_ra>
// kernel: tpu_custom_call.1
= control target key start
LH: loop header
LB: loop body
LE: loop exit
PB: predicated region body
PF: predicated region fallthrough
CT: control target
= control target key end

     0   :  { %8 = vsyncpa [#allocation4], 0  ;;  %s120_s0 = inlined_call_operand.<no memory space> [shape: f32[1], index: 0, kind: input, shape index: {}]   ;;  %s121_s1 = inlined_call_operand.hbm [shape: f32[1,2048], index: 1, kind: input, shape index: {}]   ;;  %s122_s2 = inlined_call_operand.hbm [shape: f32[1,2048], index: 2, kind: output, shape index: {}]  }
   0x1   :  { %9 = vsyncpa [#allocation5], 0  ;;  %s94_s9 = smov [#allocation3]  }
   0x2   :  { %s18_s10 = sshll.u32 %s94_s9, 4  ;;  %s19_s10 = int_to_ptr.vmem [resolvable:$true] %s18_s10 }
   0x3   :  { %s58_s11 = scalar_lea.vmem %s19_s10, 256  ;;  %p63_p1 = scmp.lt.s32.totalorder %s19_s10, %s19_s10 }
   0x4   :  { %p59_p0 = scmp.ne.s32.totalorder %s19_s10, %s58_s11  ;;  %p64_p2 = scmp.lt.s32.totalorder %s58_s11, %s58_s11 }
   0x6   :  { %p65_p3 = por %p64_p2, %p63_p1 }
   0x8   :  { %p66_p4 = pnand %p65_p3, %p59_p0 }
   0xa   :  { %69 = shalt.err (!%p66_p4)
}
   0xb   :  { %21 = dma.hbm_to_vmem [thread:$0]  %s121_s1, 256, %s19_s10, [#allocation4]  }
   0xc   :  { %90 = dma.done.wait [#allocation4], 256  }
   0xd   :  { %91 = vsyncadd [#allocation4], 4294967040  ;;  %v28_v0 = vstv %s120_s0  ;;  %s95_s16 = smov [#allocation6]   ;;  %v26_v1 = vld [vmem:[#allocation3] sm:$0xff]  ;;  %v27_v2 = vld [vmem:[#allocation3 + $0x8] sm:$0xff] }
   0xe   :  { %s39_s17 = sshll.u32 %s95_s16, 4  ;;  %v29_v3 = vmul.f32 %v28_v0, %v26_v1  ;;  %v30_v4 = vmul.f32 %v28_v0, %v27_v2  ;;  %s40_s17 = int_to_ptr.vmem [resolvable:$true] %s39_s17 }
   0xf   :  { %s70_s18 = scalar_lea.vmem %s40_s17, 256  ;;  %p75_p6 = scmp.lt.s32.totalorder %s40_s17, %s40_s17 }
  0x10   :  { %31 = vst [vmem:[#allocation6] sm:$0xff] %v29_v3  ;;  %32 = vst [vmem:[#allocation6 + $0x8] sm:$0xff] %v30_v4  ;;  %p71_p5 = scmp.ne.s32.totalorder %s40_s17, %s70_s18  ;;  %p76_p7 = scmp.lt.s32.totalorder %s70_s18, %s70_s18 }
  0x12   :  { %p77_p8 = por %p76_p7, %p75_p6 }
  0x14   :  { %p78_p9 = pnand %p77_p8, %p71_p5 }
  0x16   :  { %81 = shalt.err (!%p78_p9)
}
  0x17   :  { %42 = dma.vmem_to_hbm [thread:$0]  %s40_s17, 256, %s122_s2, [#allocation5]  }
  0x18   :  { %92 = dma.done.wait [#allocation5], 256  }
  0x19   :  { %93 = vsyncadd [#allocation5], 4294967040 }
  0x1a   :  { %46 = vsyncpa [#allocation4], 1 }
  0x1b   :  { %47 = vsyncpa [#allocation5], 1 }

</bundles_post_ra>
